<compile_context>
chip_gen: v7x
topology: tpu7x:2x2x1
jax: 0.10.0
libtpu: 0.0.40
codegen_flags: <defaults>
</compile_context>

<pallas_src>
import functools

import jax
import jax.numpy as jnp
from jax.experimental import pallas as pl
from jax.experimental.pallas import tpu as pltpu


def _round_up(n, m):
    return ((n + m - 1) // m) * m


def _mlp_kernel(x_ref, w1_ref, b1_ref, w2_ref, b2_ref, w3_ref, b3_ref, o_ref):
    """Fused 3-layer MLP on one batch tile.

    x_ref : (TB, 784)   f32 (as stored in HBM; cast in-kernel to compute dtype)
    w1_ref: (784, 64)   compute dtype
    b1_ref: (1, 64)     f32
    w2_ref: (64, 64)    compute dtype
    b2_ref: (1, 64)     f32
    w3_ref: (64, 128)   compute dtype (10 real cols + 118 zero pad)
    b3_ref: (1, 128)    f32
    o_ref : (TB, 128)   compute dtype   lane-dense output slab
    """
    # In-kernel cast: x stays f32 in HBM (no host-side cast pass); the VPU
    # cast is hidden under the x DMA.  No-op when compute dtype is f32.
    x = x_ref[...].astype(w1_ref.dtype)

    # Layer 1: Linear(784 -> 64) + ReLU.  MXU matmul with f32 accumulation;
    # bias add / ReLU stay in f32 (VPU-friendly on v5e even with bf16 inputs).
    h1 = jnp.dot(x, w1_ref[...], preferred_element_type=jnp.float32)
    h1 = jnp.maximum(h1 + b1_ref[...], 0.0)

    # Layer 2: Linear(64 -> 64) + ReLU.
    h2 = jnp.dot(h1.astype(w2_ref.dtype), w2_ref[...],
                 preferred_element_type=jnp.float32)
    h2 = jnp.maximum(h2 + b2_ref[...], 0.0)

    # Layer 3: Linear(64 -> 128-padded) — raw logits, lane-dense store.
    logits = jnp.dot(h2.astype(w3_ref.dtype), w3_ref[...],
                     preferred_element_type=jnp.float32)
    o_ref[...] = (logits + b3_ref[...]).astype(o_ref.dtype)


@functools.partial(
    jax.jit, static_argnames=("batch_tile", "compute_dtype", "out_dtype"))
def mlp_forward(x_nchw, params, *, batch_tile=None,
                compute_dtype=jnp.float32, out_dtype=None):
    """Run the NeuralNetwork forward pass via a batch-tiled pallas_call.

    x_nchw: (B, 1, 28, 28) float32 (NCHW, as the PyTorch module receives it)
    params: dict w1,b1,w2,b2,w3,b3 with weights stored (in_features, out_features)
    """
    if out_dtype is None:
        out_dtype = compute_dtype

    B = x_nchw.shape[0]
    # nn.Flatten(): (B, C, H, W) -> (B, C*H*W), contiguous row-major order.
    # x stays in its HBM dtype (f32): no host-side cast / pad passes.
    x = x_nchw.reshape(B, -1)
    K = x.shape[1]                      # 784
    H1 = params["w1"].shape[1]          # 64
    H2 = params["w2"].shape[1]          # 64
    NO = params["w3"].shape[1]          # 10

    # --- weight prep (tiny, VMEM-resident) -----------------------------------
    # Output padding: 10 -> 128 lane-dense output slab (unmasked vst).
    N_pad = _round_up(NO, 128)
    w1 = params["w1"].astype(compute_dtype)                       # (784, 64)
    w2 = params["w2"].astype(compute_dtype)                       # (64, 64)
    w3 = jnp.pad(params["w3"], ((0, 0), (0, N_pad - NO))).astype(compute_dtype)
    b1 = params["b1"].reshape(1, H1).astype(jnp.float32)
    b2 = params["b2"].reshape(1, H2).astype(jnp.float32)
    b3 = jnp.pad(params["b3"], ((0, N_pad - NO),)).reshape(1, N_pad)
    b3 = b3.astype(jnp.float32)

    # --- batch tiling ---------------------------------------------------------
    # TB: multiple of 8, default 2048.  f32 budget: 2 x (TB*784*4B) x-buffers
    # (~12.3 MiB) + ~0.3 MiB weights + 2 x (TB*128*dtype) out-buffers
    # (<=2 MiB)  < 16 MiB — inside the 32 MiB scoped VMEM on v5e/v6e/v7x.
    if batch_tile is None:
        TB = min(2048, _round_up(max(B, 1), 8))
    else:
        TB = _round_up(batch_tile, 8)

    # No batch padding: partial trailing tile is handled by Pallas (garbage
    # rows are masked on writeback; output has exactly B rows).
    grid = (pl.cdiv(B, TB),)
    const = lambda i: (0, 0)  # weights/biases: same block every step -> resident

    out = pl.pallas_call(
        _mlp_kernel,
        out_shape=jax.ShapeDtypeStruct((B, N_pad), out_dtype),
        grid=grid,
        in_specs=[
            # x: streamed per batch tile; second dim = full array dim (784),
            # so it is exempt from the 128-lane divisibility rule.
            pl.BlockSpec((TB, K), lambda i: (i, 0)),
            pl.BlockSpec((K, H1), const),                  # w1 (full extent)
            pl.BlockSpec((1, H1), const),                  # b1
            pl.BlockSpec((H1, H2), const),                 # w2
            pl.BlockSpec((1, H2), const),                  # b2
            pl.BlockSpec((H2, N_pad), const),              # w3 (padded to 128 cols)
            pl.BlockSpec((1, N_pad), const),               # b3 (padded)
        ],
        out_specs=pl.BlockSpec((TB, N_pad), lambda i: (i, 0)),
        compiler_params=pltpu.CompilerParams(
            dimension_semantics=("parallel",),
            vmem_limit_bytes=32 * 1024 * 1024,
        ),
    )(x, w1, b1, w2, b2, w3, b3)

    # Strip the 118 zero logit columns (batch is already exactly B rows).
    return out[:, :NO]


def init_params(key):
    """Deterministic init mimicking torch.nn.Linear default:
    U(-1/sqrt(fan_in), 1/sqrt(fan_in)) for both weight and bias.
    Weights stored (in_features, out_features)."""
    dims = [(28 * 28, 64), (64, 64), (64, 10)]
    params = {}
    for i, (fan_in, fan_out) in enumerate(dims, start=1):
        key, kw, kb = jax.random.split(key, 3)
        bound = 1.0 / jnp.sqrt(float(fan_in))
        params[f"w{i}"] = jax.random.uniform(
            kw, (fan_in, fan_out), jnp.float32, -bound, bound)
        params[f"b{i}"] = jax.random.uniform(
            kb, (fan_out,), jnp.float32, -bound, bound)
    return params


if __name__ == "__main__":
    key = jax.random.PRNGKey(0)
    key, kx = jax.random.split(key)

    # Small batch of FashionMNIST-shaped inputs: (B=8, C=1, H=28, W=28), NCHW.
    x = jax.random.normal(kx, (8, 1, 28, 28), dtype=jnp.float32)
    params = init_params(key)

    # Plain-JAX reference (matches torch forward exactly).
    xf = x.reshape(x.shape[0], -1)
    h1 = jnp.maximum(xf @ params["w1"] + params["b1"], 0.0)
    h2 = jnp.maximum(h1 @ params["w2"] + params["b2"], 0.0)
    ref = h2 @ params["w3"] + params["b3"]

    # f32 path (default, exact PyTorch parity; best on v5e).
    logits = mlp_forward(x, params, compute_dtype=jnp.float32)
    jax.block_until_ready(logits)
    assert logits.shape == (8, 10)
    assert jnp.allclose(logits, ref, atol=1e-4, rtol=1e-4)

    # bf16 bandwidth mode (v6e/v7x): weights bf16 host-side, x cast in-kernel,
    # f32 accumulate, bf16 output store; loose tolerance.
    logits_bf16 = mlp_forward(x, params, compute_dtype=jnp.bfloat16)
    jax.block_until_ready(logits_bf16)
    assert logits_bf16.shape == (8, 10)
    assert jnp.all(jnp.isfinite(logits_bf16.astype(jnp.float32)))
    assert jnp.allclose(logits_bf16.astype(jnp.float32), ref, atol=1e-1, rtol=1e-1)

    print("KERNEL_OK")
</pallas_src>

<mosaic_0001>
module attributes {stable_mosaic.version = 11 : i64} {
  func.func @_mlp_kernel(%arg0: i32, %arg1: memref<8x784xf32, #tpu.memory_space<vmem>>, %arg2: memref<784x64xf32, #tpu.memory_space<vmem>>, %arg3: memref<1x64xf32, #tpu.memory_space<vmem>>, %arg4: memref<64x64xf32, #tpu.memory_space<vmem>>, %arg5: memref<1x64xf32, #tpu.memory_space<vmem>>, %arg6: memref<64x128xf32, #tpu.memory_space<vmem>>, %arg7: memref<1x128xf32, #tpu.memory_space<vmem>>, %arg8: memref<8x128xf32, #tpu.memory_space<vmem>>) attributes {dimension_semantics = [#tpu.dimension_semantics<parallel>], iteration_bounds = array<i64: 1>, scalar_prefetch = 0 : i64, scratch_operands = 0 : i64, tpu.core_type = #tpu.core_type<tc>, window_params = [{transform_indices = @transform_0, window_bounds = array<i64: 8, 784>}, {pipeline_mode = #tpu.pipeline_mode<synchronous>, transform_indices = @transform_1, window_bounds = array<i64: 784, 64>}, {pipeline_mode = #tpu.pipeline_mode<synchronous>, transform_indices = @transform_2, window_bounds = array<i64: 1, 64>}, {pipeline_mode = #tpu.pipeline_mode<synchronous>, transform_indices = @transform_3, window_bounds = array<i64: 64, 64>}, {pipeline_mode = #tpu.pipeline_mode<synchronous>, transform_indices = @transform_4, window_bounds = array<i64: 1, 64>}, {pipeline_mode = #tpu.pipeline_mode<synchronous>, transform_indices = @transform_5, window_bounds = array<i64: 64, 128>}, {pipeline_mode = #tpu.pipeline_mode<synchronous>, transform_indices = @transform_6, window_bounds = array<i64: 1, 128>}, {transform_indices = @transform_7, window_bounds = array<i64: 8, 128>}]} {
    %c0 = arith.constant 0 : index
    %c0_0 = arith.constant 0 : index
    %0 = vector.load %arg1[%c0, %c0_0] : memref<8x784xf32, #tpu.memory_space<vmem>>, vector<8x784xf32>
    %c0_1 = arith.constant 0 : index
    %c0_2 = arith.constant 0 : index
    %1 = vector.load %arg2[%c0_1, %c0_2] : memref<784x64xf32, #tpu.memory_space<vmem>>, vector<784x64xf32>
    %cst = arith.constant dense<0.000000e+00> : vector<8x64xf32>
    %2 = tpu.matmul %0, %1, %cst {dimension_numbers = #tpu.dot_dimension_numbers<[1], [0], [0], [1], [0, 0, 1, 1], [], []>} : vector<8x784xf32>, vector<784x64xf32>, vector<8x64xf32> -> vector<8x64xf32>
    %c0_3 = arith.constant 0 : index
    %c0_4 = arith.constant 0 : index
    %3 = vector.load %arg3[%c0_3, %c0_4] : memref<1x64xf32, #tpu.memory_space<vmem>>, vector<1x64xf32>
    %4 = vector.broadcast %3 : vector<1x64xf32> to vector<8x64xf32>
    %5 = arith.addf %2, %4 : vector<8x64xf32>
    %cst_5 = arith.constant 0.000000e+00 : f32
    %6 = vector.broadcast %cst_5 : f32 to vector<8x64xf32>
    %7 = arith.maximumf %5, %6 : vector<8x64xf32>
    %c0_6 = arith.constant 0 : index
    %c0_7 = arith.constant 0 : index
    %8 = vector.load %arg4[%c0_6, %c0_7] : memref<64x64xf32, #tpu.memory_space<vmem>>, vector<64x64xf32>
    %cst_8 = arith.constant dense<0.000000e+00> : vector<8x64xf32>
    %9 = tpu.matmul %7, %8, %cst_8 {dimension_numbers = #tpu.dot_dimension_numbers<[1], [0], [0], [1], [0, 0, 1, 1], [], []>} : vector<8x64xf32>, vector<64x64xf32>, vector<8x64xf32> -> vector<8x64xf32>
    %c0_9 = arith.constant 0 : index
    %c0_10 = arith.constant 0 : index
    %10 = vector.load %arg5[%c0_9, %c0_10] : memref<1x64xf32, #tpu.memory_space<vmem>>, vector<1x64xf32>
    %11 = vector.broadcast %10 : vector<1x64xf32> to vector<8x64xf32>
    %12 = arith.addf %9, %11 : vector<8x64xf32>
    %cst_11 = arith.constant 0.000000e+00 : f32
    %13 = vector.broadcast %cst_11 : f32 to vector<8x64xf32>
    %14 = arith.maximumf %12, %13 : vector<8x64xf32>
    %c0_12 = arith.constant 0 : index
    %c0_13 = arith.constant 0 : index
    %15 = vector.load %arg6[%c0_12, %c0_13] : memref<64x128xf32, #tpu.memory_space<vmem>>, vector<64x128xf32>
    %cst_14 = arith.constant dense<0.000000e+00> : vector<8x128xf32>
    %16 = tpu.matmul %14, %15, %cst_14 {dimension_numbers = #tpu.dot_dimension_numbers<[1], [0], [0], [1], [0, 0, 1, 1], [], []>} : vector<8x64xf32>, vector<64x128xf32>, vector<8x128xf32> -> vector<8x128xf32>
    %c0_15 = arith.constant 0 : index
    %c0_16 = arith.constant 0 : index
    %17 = vector.load %arg7[%c0_15, %c0_16] : memref<1x128xf32, #tpu.memory_space<vmem>>, vector<1x128xf32>
    %18 = vector.broadcast %17 : vector<1x128xf32> to vector<8x128xf32>
    %19 = arith.addf %16, %18 : vector<8x128xf32>
    %c0_17 = arith.constant 0 : index
    %c0_18 = arith.constant 0 : index
    %20 = vector.load %arg8[%c0_17, %c0_18] : memref<8x128xf32, #tpu.memory_space<vmem>>, vector<8x128xf32>
    tpu.vector_store %arg8[%c0_17, %c0_18], %19 {strides = array<i32>} : memref<8x128xf32, #tpu.memory_space<vmem>>, vector<8x128xf32>,
    return
  }
  func.func @transform_0(%arg0: i32) -> (i32, i32) {
    %c0_i32 = arith.constant 0 : i32
    %c0_i32_0 = arith.constant 0 : i32
    return %arg0, %c0_i32 : i32, i32
  }
  func.func @transform_1(%arg0: i32) -> (i32, i32) {
    %c0_i32 = arith.constant 0 : i32
    %c0_i32_0 = arith.constant 0 : i32
    %c0_i32_1 = arith.constant 0 : i32
    return %c0_i32, %c0_i32_0 : i32, i32
  }
  func.func @transform_2(%arg0: i32) -> (i32, i32) {
    %c0_i32 = arith.constant 0 : i32
    %c0_i32_0 = arith.constant 0 : i32
    %c0_i32_1 = arith.constant 0 : i32
    return %c0_i32, %c0_i32_0 : i32, i32
  }
  func.func @transform_3(%arg0: i32) -> (i32, i32) {
    %c0_i32 = arith.constant 0 : i32
    %c0_i32_0 = arith.constant 0 : i32
    %c0_i32_1 = arith.constant 0 : i32
    return %c0_i32, %c0_i32_0 : i32, i32
  }
  func.func @transform_4(%arg0: i32) -> (i32, i32) {
    %c0_i32 = arith.constant 0 : i32
    %c0_i32_0 = arith.constant 0 : i32
    %c0_i32_1 = arith.constant 0 : i32
    return %c0_i32, %c0_i32_0 : i32, i32
  }
  func.func @transform_5(%arg0: i32) -> (i32, i32) {
    %c0_i32 = arith.constant 0 : i32
    %c0_i32_0 = arith.constant 0 : i32
    %c0_i32_1 = arith.constant 0 : i32
    return %c0_i32, %c0_i32_0 : i32, i32
  }
  func.func @transform_6(%arg0: i32) -> (i32, i32) {
    %c0_i32 = arith.constant 0 : i32
    %c0_i32_0 = arith.constant 0 : i32
    %c0_i32_1 = arith.constant 0 : i32
    return %c0_i32, %c0_i32_0 : i32, i32
  }
  func.func @transform_7(%arg0: i32) -> (i32, i32) {
    %c0_i32 = arith.constant 0 : i32
    %c0_i32_0 = arith.constant 0 : i32
    return %arg0, %c0_i32 : i32, i32
  }
}

</mosaic_0001>

<bundles_post_ra>
// kernel: mlp_forward.1
= control target key start
LH: loop header
LB: loop body
LE: loop exit
PB: predicated region body
PF: predicated region fallthrough
CT: control target
= control target key end

     0   :  { %s1390_s0 = inlined_call_operand.vmem [shape: f32[8,784], index: 0, kind: input, shape index: {}]   ;;  %s1391_s1 = inlined_call_operand.vmem [shape: f32[784,64], index: 1, kind: input, shape index: {}]   ;;  %s1392_s2 = inlined_call_operand.vmem [shape: f32[1,64], index: 2, kind: input, shape index: {}]   ;;  %s1393_s3 = inlined_call_operand.vmem [shape: f32[64,64], index: 3, kind: input, shape index: {}]   ;;  %s1394_s4 = inlined_call_operand.vmem [shape: f32[1,64], index: 4, kind: input, shape index: {}]   ;;  %s1395_s5 = inlined_call_operand.vmem [shape: f32[64,128], index: 5, kind: input, shape index: {}]   ;;  %s1396_s6 = inlined_call_operand.vmem [shape: f32[1,128], index: 6, kind: input, shape index: {}]   ;;  %s1397_s7 = inlined_call_operand.hbm [shape: f32[8,128], index: 7, kind: output, shape index: {}]  }
   0x1   :  { %v50_v0 = vld [vmem:[%s1391_s1 + $0x80] sm:$0xff]  ;;  %v51_v1 = vld [vmem:[%s1391_s1 + $0x88] sm:$0xff]  ;;  %v52_v11 = vld [vmem:[%s1391_s1 + $0x90] sm:$0xff] }
   0x2   :  { %v34_v2 = vld [vmem:[%s1391_s1] sm:$0xff]  ;;  %v794_v3 = vpack.c.bf16 %v51_v1, %v50_v0  ;;  %v35_v4 = vld [vmem:[%s1391_s1 + $0x8] sm:$0xff]  ;;  %v53_v13 = vld [vmem:[%s1391_s1 + $0x98] sm:$0xff] }
   0x3   :  { %v82_v5 = vld [vmem:[%s1391_s1 + $0x180] sm:$0xff]  ;;  %v83_v6 = vld [vmem:[%s1391_s1 + $0x188] sm:$0xff]  ;;  %v796_v7 = vpack.c.bf16 %v35_v4, %v34_v2  ;;  %v36_v14 = vld [vmem:[%s1391_s1 + $0x10] sm:$0xff]  ;;  %v798_v16 = vpack.c.bf16 %v53_v13, %v52_v11 }
   0x4   :  { %v826_v8 = vpack.c.bf16 %v83_v6, %v82_v5  ;;  %v66_v9 = vld [vmem:[%s1391_s1 + $0x100] sm:$0xff]  ;;  %v67_v10 = vld [vmem:[%s1391_s1 + $0x108] sm:$0xff]  ;;  %795 = vmatprep.subr.bf16.mxu0 %v794_v3  ;;  %v37_v15 = vld [vmem:[%s1391_s1 + $0x18] sm:$0xff] }
   0x5   :  { %v828_v12 = vpack.c.bf16 %v67_v10, %v66_v9  ;;  %797 = vmatpush3.bf16.msra.mxu0 %v796_v7  ;;  %v800_v17 = vpack.c.bf16 %v37_v15, %v36_v14  ;;  %v84_v18 = vld [vmem:[%s1391_s1 + $0x190] sm:$0xff]  ;;  %v85_v19 = vld [vmem:[%s1391_s1 + $0x198] sm:$0xff]  ;;  %v54_v23 = vld [vmem:[%s1391_s1 + $0xa0] sm:$0xff] }
   0x6   :  { %827 = vmatprep.subr.bf16.mxu1 %v826_v8  ;;  %v68_v20 = vld [vmem:[%s1391_s1 + $0x110] sm:$0xff]  ;;  %v830_v21 = vpack.c.bf16 %v85_v19, %v84_v18  ;;  %v69_v22 = vld [vmem:[%s1391_s1 + $0x118] sm:$0xff]  ;;  %v55_v24 = vld [vmem:[%s1391_s1 + $0xa8] sm:$0xff]  ;;  %799 = vmatprep.subr.bf16.mxu0 %v798_v16 }
   0x7   :  { %829 = vmatpush3.bf16.msra.mxu1 %v828_v12  ;;  %v832_v25 = vpack.c.bf16 %v69_v22, %v68_v20  ;;  %v802_v26 = vpack.c.bf16 %v55_v24, %v54_v23  ;;  %v38_v27 = vld [vmem:[%s1391_s1 + $0x20] sm:$0xff]  ;;  %v39_v28 = vld [vmem:[%s1391_s1 + $0x28] sm:$0xff]  ;;  %v56_v35 = vld [vmem:[%s1391_s1 + $0xb0] sm:$0xff] }
   0x8   :  { %v86_v29 = vld [vmem:[%s1391_s1 + $0x1a0] sm:$0xff]  ;;  %831 = vmatprep.subr.bf16.mxu1 %v830_v21  ;;  %v87_v30 = vld [vmem:[%s1391_s1 + $0x1a8] sm:$0xff]  ;;  %v804_v33 = vpack.c.bf16 %v39_v28, %v38_v27  ;;  %v57_v36 = vld [vmem:[%s1391_s1 + $0xb8] sm:$0xff] }
   0x9   :  { %v70_v31 = vld [vmem:[%s1391_s1 + $0x120] sm:$0xff]  ;;  %v71_v32 = vld [vmem:[%s1391_s1 + $0x128] sm:$0xff]  ;;  %801 = vmatpush3.bf16.msra.mxu0 %v800_v17  ;;  %v834_v34 = vpack.c.bf16 %v87_v30, %v86_v29  ;;  %v40_v37 = vld [vmem:[%s1391_s1 + $0x30] sm:$0xff]  ;;  %v806_v39 = vpack.c.bf16 %v57_v36, %v56_v35 }
   0xa   :  { %803 = vmatprep.subr.bf16.mxu0 %v802_v26  ;;  %v836_v38 = vpack.c.bf16 %v71_v32, %v70_v31  ;;  %v41_v40 = vld [vmem:[%s1391_s1 + $0x38] sm:$0xff]  ;;  %v88_v41 = vld [vmem:[%s1391_s1 + $0x1b0] sm:$0xff]  ;;  %v58_v46 = vld [vmem:[%s1391_s1 + $0xc0] sm:$0xff] }
   0xb   :  { %833 = vmatpush3.bf16.msra.mxu1 %v832_v25  ;;  %v89_v42 = vld [vmem:[%s1391_s1 + $0x1b8] sm:$0xff]  ;;  %v72_v44 = vld [vmem:[%s1391_s1 + $0x130] sm:$0xff]  ;;  %v59_v47 = vld [vmem:[%s1391_s1 + $0xc8] sm:$0xff]  ;;  %v808_v48 = vpack.c.bf16 %v41_v40, %v40_v37 }
   0xc   :  { %835 = vmatprep.subr.bf16.mxu1 %v834_v34  ;;  %v838_v43 = vpack.c.bf16 %v89_v42, %v88_v41  ;;  %v73_v45 = vld [vmem:[%s1391_s1 + $0x138] sm:$0xff]  ;;  %v90_v49 = vld [vmem:[%s1391_s1 + $0x1c0] sm:$0xff]  ;;  %v91_v50 = vld [vmem:[%s1391_s1 + $0x1c8] sm:$0xff]  ;;  %v810_v52 = vpack.c.bf16 %v59_v47, %v58_v46 }
   0xd   :  { %805 = vmatpush3.bf16.msra.mxu0 %v804_v33  ;;  %v840_v51 = vpack.c.bf16 %v73_v45, %v72_v44  ;;  %v42_v53 = vld [vmem:[%s1391_s1 + $0x40] sm:$0xff]  ;;  %v43_v54 = vld [vmem:[%s1391_s1 + $0x48] sm:$0xff]  ;;  %v842_v56 = vpack.c.bf16 %v91_v50, %v90_v49  ;;  %v60_v58 = vld [vmem:[%s1391_s1 + $0xd0] sm:$0xff]  ;;  %v945_v50 = vmov 0.0|0.0  }
   0xe   :  { %807 = vmatprep.subr.bf16.mxu0 %v806_v39  ;;  %v74_v55 = vld [vmem:[%s1391_s1 + $0x140] sm:$0xff]  ;;  %v75_v57 = vld [vmem:[%s1391_s1 + $0x148] sm:$0xff]  ;;  %v61_v59 = vld [vmem:[%s1391_s1 + $0xd8] sm:$0xff]  ;;  %v812_v62 = vpack.c.bf16 %v43_v54, %v42_v53 }
   0xf   :  { %837 = vmatpush3.bf16.msra.mxu1 %v836_v38  ;;  %v92_v60 = vld [vmem:[%s1391_s1 + $0x1d0] sm:$0xff]  ;;  %v93_v61 = vld [vmem:[%s1391_s1 + $0x1d8] sm:$0xff]  ;;  %v844_v63 = vpack.c.bf16 %v75_v57, %v74_v55  ;;  %v814_v0 = vpack.c.bf16 %v61_v59, %v60_v58  ;;  %v62_v6 = vld [vmem:[%s1391_s1 + $0xe0] sm:$0xff] }
  0x10   :  { %839 = vmatprep.subr.bf16.mxu1 %v838_v43  ;;  %v44_v1 = vld [vmem:[%s1391_s1 + $0x50] sm:$0xff]  ;;  %v45_v2 = vld [vmem:[%s1391_s1 + $0x58] sm:$0xff]  ;;  %v846_v4 = vpack.c.bf16 %v93_v61, %v92_v60  ;;  %v63_v7 = vld [vmem:[%s1391_s1 + $0xe8] sm:$0xff] }
  0x11   :  { %809 = vmatpush3.bf16.msra.mxu0 %v808_v48  ;;  %v76_v3 = vld [vmem:[%s1391_s1 + $0x150] sm:$0xff]  ;;  %v77_v5 = vld [vmem:[%s1391_s1 + $0x158] sm:$0xff]  ;;  %v94_v8 = vld [vmem:[%s1391_s1 + $0x1e0] sm:$0xff]  ;;  %v816_v10 = vpack.c.bf16 %v45_v2, %v44_v1  ;;  %v818_v14 = vpack.c.bf16 %v63_v7, %v62_v6 }
  0x12   :  { %811 = vmatprep.subr.bf16.mxu0 %v810_v52  ;;  %v95_v9 = vld [vmem:[%s1391_s1 + $0x1e8] sm:$0xff]  ;;  %v46_v11 = vld [vmem:[%s1391_s1 + $0x60] sm:$0xff]  ;;  %v848_v13 = vpack.c.bf16 %v77_v5, %v76_v3  ;;  %v64_v19 = vld [vmem:[%s1391_s1 + $0xf0] sm:$0xff] }
  0x13   :  { %841 = vmatpush3.bf16.msra.mxu1 %v840_v51  ;;  %v28_v12 = vld [vmem:[%s1390_s0 + $0x8] sm:$0xff]  ;;  %v78_v16 = vld [vmem:[%s1391_s1 + $0x160] sm:$0xff]  ;;  %v850_v18 = vpack.c.bf16 %v95_v9, %v94_v8  ;;  %v65_v20 = vld [vmem:[%s1391_s1 + $0xf8] sm:$0xff] }
  0x14   :  { %843 = vmatprep.subr.bf16.mxu1 %v842_v56  ;;  %v47_v15 = vld [vmem:[%s1391_s1 + $0x68] sm:$0xff]  ;;  %207 = vmatprep.mubr.f32.mxu0 %v28_v12  ;;  %v30_v21 = vld [vmem:[%s1390_s0 + $0x18] sm:$0xff]  ;;  %v96_v22 = vld [vmem:[%s1391_s1 + $0x1f0] sm:$0xff]  ;;  %v822_v26 = vpack.c.bf16 %v65_v20, %v64_v19 }
  0x15   :  { %813 = vmatpush3.bf16.msra.mxu0 %v812_v62  ;;  %v79_v17 = vld [vmem:[%s1391_s1 + $0x168] sm:$0xff]  ;;  %v97_v23 = vld [vmem:[%s1391_s1 + $0x1f8] sm:$0xff]  ;;  %277 = vmatprep.mubr.f32.mxu1 %v30_v21  ;;  %v820_v24 = vpack.c.bf16 %v47_v15, %v46_v11  ;;  %v48_v27 = vld [vmem:[%s1391_s1 + $0x70] sm:$0xff] }
  0x16   :  { %815 = vmatprep.subr.bf16.mxu0 %v814_v0  ;;  %v852_v25 = vpack.c.bf16 %v79_v17, %v78_v16  ;;  %v49_v28 = vld [vmem:[%s1391_s1 + $0x78] sm:$0xff]  ;;  %v80_v29 = vld [vmem:[%s1391_s1 + $0x170] sm:$0xff]  ;;  %v854_v30 = vpack.c.bf16 %v97_v23, %v96_v22  ;;  %v114_v32 = vld [vmem:[%s1391_s1 + $0x280] sm:$0xff] }
  0x17   :  { %845 = vmatpush3.bf16.msra.mxu1 %v844_v63  ;;  %v81_v31 = vld [vmem:[%s1391_s1 + $0x178] sm:$0xff]  ;;  %v115_v33 = vld [vmem:[%s1391_s1 + $0x288] sm:$0xff]  ;;  %v824_v34 = vpack.c.bf16 %v49_v28, %v48_v27  ;;  %v98_v37 = vld [vmem:[%s1391_s1 + $0x200] sm:$0xff] }
  0x18   :  { %847 = vmatprep.subr.bf16.mxu1 %v846_v4  ;;  %v856_v35 = vpack.c.bf16 %v81_v31, %v80_v29  ;;  %v858_v36 = vpack.c.bf16 %v115_v33, %v114_v32  ;;  %v99_v38 = vld [vmem:[%s1391_s1 + $0x208] sm:$0xff]  ;;  %v116_v39 = vld [vmem:[%s1391_s1 + $0x290] sm:$0xff]  ;;  %v117_v40 = vld [vmem:[%s1391_s1 + $0x298] sm:$0xff] }
  0x19   :  { %817 = vmatpush3.bf16.msra.mxu0 %v816_v10  ;;  %v27_v41 = vld [vmem:[%s1390_s0] sm:$0xff]  ;;  %v860_v42 = vpack.c.bf16 %v99_v38, %v98_v37  ;;  %v29_v43 = vld [vmem:[%s1390_s0 + $0x10] sm:$0xff]  ;;  %v862_v45 = vpack.c.bf16 %v117_v40, %v116_v39  ;;  %v101_v46 = vld [vmem:[%s1391_s1 + $0x218] sm:$0xff] }
  0x1a   :  { %819 = vmatprep.subr.bf16.mxu0 %v818_v14  ;;  %v100_v44 = vld [vmem:[%s1391_s1 + $0x210] sm:$0xff]  ;;  %v118_v47 = vld [vmem:[%s1391_s1 + $0x2a0] sm:$0xff]  ;;  %v119_v48 = vld [vmem:[%s1391_s1 + $0x2a8] sm:$0xff] }
  0x1b   :  { %849 = vmatpush3.bf16.msra.mxu1 %v848_v13  ;;  %v32_v49 = vld [vmem:[%s1390_s0 + $0x28] sm:$0xff]  ;;  %v130_v51 = vld [vmem:[%s1391_s1 + $0x300] sm:$0xff] }
  0x1c   :  { %851 = vmatprep.subr.bf16.mxu1 %v850_v18  ;;  %v131_v52 = vld [vmem:[%s1391_s1 + $0x308] sm:$0xff] }
  0x1d   :  { %821 = vmatpush3.bf16.msra.mxu0 %v820_v24  ;;  %v891_v53 = vpack.c.bf16 %v131_v52, %v130_v51 }
  0x1e   :  { %823 = vmatprep.subr.bf16.mxu0 %v822_v26 }
  0x1f   :  { %853 = vmatpush3.bf16.msra.mxu1 %v852_v25 }
  0x20   :  { %855 = vmatprep.subr.bf16.mxu1 %v854_v30 }
  0x21   :  { %825 = vmatpush3.bf16.msra.mxu0 %v824_v34 }
  0x22   :  { %859 = vmatprep.subr.bf16.mxu0 %v858_v36 }
  0x23   :  { %857 = vmatpush3.bf16.msra.mxu1 %v856_v35 }
  0x24   :  { %890 = vmatprep.subr.bf16.mxu1 %v945_v50  ;;  %208 = vmatmul.mubr.f32.vlgmr.msra.gmra.mrb[0].mxu0 %v27_v41 }
  0x25   :  { %12 = vsyncpa [#allocation3], 0  ;;  %861 = vmatpush3.bf16.msra.mxu0 %v860_v42  ;;  %v864_v54 = vpack.c.bf16 %v101_v46, %v100_v44  ;;  %v866_v55 = vpack.c.bf16 %v119_v48, %v118_v47  ;;  %v102_v56 = vld [vmem:[%s1391_s1 + $0x220] sm:$0xff]  ;;  %v103_v57 = vld [vmem:[%s1391_s1 + $0x228] sm:$0xff]  ;;  %347 = vmatprep.mubr.f32.mxu0 %v32_v49  ;;  %vm946_vm0 = vmmov 0   ;;  %v947_v60 = vmov 0.0  }
  0x26   :  { %278 = vmatmul.mubr.f32.vlgmr.msra.gmra.mrb[0].mxu1 %v29_v43  ;;  %863 = vmatprep.subr.bf16.mxu0 %v862_v45  ;;  %v120_v58 = vld [vmem:[%s1391_s1 + $0x2b0] sm:$0xff]  ;;  %v121_v59 = vld [vmem:[%s1391_s1 + $0x2b8] sm:$0xff]  ;;  %vm139_vm1 = vcmask 130048   ;;  %v868_v62 = vpack.c.bf16 %v103_v57, %v102_v56  ;;  %v122_v2 = vld [vmem:[%s1391_s1 + $0x2c0] sm:$0xff]  ;;  %vm439_vm2 = vcmask 523264   ;;  %s948_s13 = smov [#allocation2]  }
  0x27   :  { %892 = vmatpush3.bf16.msra.mxu1 %v891_v53  ;;  %753 = vmatprep.mubr.msk.f32.mxu1 %vm946_vm0, %v947_v60  ;;  %v33_v61 = vld [vmem:[%s1390_s0 + $0x30] sm:$0xff]  ;;  %v870_v63 = vpack.c.bf16 %v121_v59, %v120_v58  ;;  %v105_v1 = vld [vmem:[%s1391_s1 + $0x238] sm:$0xff]  ;;  %v123_v3 = vld [vmem:[%s1391_s1 + $0x2c8] sm:$0xff]  ;;  %s609_s14 = sshll.u32 %s948_s13, 4  ;;  %s610_s14 = int_to_ptr.vmem [resolvable:$true] %s609_s14 }
  0x28   :  { %893 = vmatprep.subr.bf16.mxu1 %v945_v50  ;;  %v104_v0 = vld [vmem:[%s1391_s1 + $0x230] sm:$0xff]  ;;  %v874_v5 = vpack.c.bf16 %v123_v3, %v122_v2  ;;  %v106_v6 = vld [vmem:[%s1391_s1 + $0x240] sm:$0xff]  ;;  %v107_v7 = vld [vmem:[%s1391_s1 + $0x248] sm:$0xff]  ;;  %p926_p1 = scmp.lt.s32.totalorder %s610_s14, %s610_s14 }
  0x29   :  { %865 = vmatpush3.bf16.msra.mxu0 %v864_v54  ;;  %v872_v4 = vpack.c.bf16 %v105_v1, %v104_v0  ;;  %v124_v8 = vld [vmem:[%s1391_s1 + $0x2d0] sm:$0xff]  ;;  %v125_v9 = vld [vmem:[%s1391_s1 + $0x2d8] sm:$0xff]  ;;  %v876_v10 = vpack.c.bf16 %v107_v7, %v106_v6  ;;  %v126_v14 = vld [vmem:[%s1391_s1 + $0x2e0] sm:$0xff] }
  0x2a   :  { %867 = vmatprep.subr.bf16.mxu0 %v866_v55  ;;  %754 = vmatmul.mubr.msk.f32.vlgmr.msra.gmra.mrb[2].mxu1 %vm139_vm1, %v33_v61  ;;  %v878_v11 = vpack.c.bf16 %v125_v9, %v124_v8  ;;  %v108_v12 = vld [vmem:[%s1391_s1 + $0x250] sm:$0xff]  ;;  %v109_v13 = vld [vmem:[%s1391_s1 + $0x258] sm:$0xff]  ;;  %v127_v15 = vld [vmem:[%s1391_s1 + $0x2e8] sm:$0xff] }
  0x2b   :  { %772 = vmatprep.mubr.msk.f32.mxu1 %vm946_vm0, %v947_v60  ;;  %v880_v16 = vpack.c.bf16 %v109_v13, %v108_v12  ;;  %v882_v17 = vpack.c.bf16 %v127_v15, %v126_v14  ;;  %v110_v18 = vld [vmem:[%s1391_s1 + $0x260] sm:$0xff]  ;;  %v111_v19 = vld [vmem:[%s1391_s1 + $0x268] sm:$0xff]  ;;  %v128_v20 = vld [vmem:[%s1391_s1 + $0x2f0] sm:$0xff] }
  0x2c   :  { %v129_v21 = vld [vmem:[%s1391_s1 + $0x2f8] sm:$0xff]  ;;  %v884_v22 = vpack.c.bf16 %v111_v19, %v110_v18  ;;  %v112_v24 = vld [vmem:[%s1391_s1 + $0x270] sm:$0xff]  ;;  %v31_v27 = vld [vmem:[%s1390_s0 + $0x20] sm:$0xff] }
  0x2d   :  { %869 = vmatpush3.bf16.msra.mxu0 %v868_v62  ;;  %v886_v23 = vpack.c.bf16 %v129_v21, %v128_v20  ;;  %v113_v25 = vld [vmem:[%s1391_s1 + $0x278] sm:$0xff]  ;;  %v424_v28 = vld [vmem:[%s1393_s3] sm:$0xff]  ;;  %v425_v29 = vld [vmem:[%s1393_s3 + $0x8] sm:$0xff] }
  0x2e   :  { %871 = vmatprep.subr.bf16.mxu0 %v870_v63  ;;  %v888_v26 = vpack.c.bf16 %v113_v25, %v112_v24  ;;  %v426_v30 = vld [vmem:[%s1393_s3 + $0x10] sm:$0xff]  ;;  %v894_v31 = vpack.c.bf16 %v425_v29, %v424_v28  ;;  %v427_v32 = vld [vmem:[%s1393_s3 + $0x18] sm:$0xff]  ;;  %v428_v34 = vld [vmem:[%s1393_s3 + $0x20] sm:$0xff] }
  0x2f   :  { %v897_v33 = vpack.c.bf16 %v427_v32, %v426_v30  ;;  %v429_v35 = vld [vmem:[%s1393_s3 + $0x28] sm:$0xff]  ;;  %v430_v37 = vld [vmem:[%s1393_s3 + $0x30] sm:$0xff]  ;;  %v431_v38 = vld [vmem:[%s1393_s3 + $0x38] sm:$0xff] }
  0x30   :  { %895 = vmatpush3.bf16.msra.mxu1 %v894_v31  ;;  %v900_v36 = vpack.c.bf16 %v429_v35, %v428_v34  ;;  %v903_v39 = vpack.c.bf16 %v431_v38, %v430_v37  ;;  %v617_v41 = vld [vmem:[%s1392_s2] ss:$0 sm:$0xff]  ;;  %v515_v57 = vld [vmem:[%s1395_s5 + $0x8] sm:$0xff]  ;;  %v516_v62 = vld [vmem:[%s1395_s5 + $0x10] sm:$0xff] }
  0x31   :  { %873 = vmatpush3.bf16.msra.mxu0 %v872_v4  ;;  %896 = vmatprep.subr.bf16.mxu1 %v945_v50  ;;  %v514_v56 = vld [vmem:[%s1395_s5] sm:$0xff]  ;;  %v517_v63 = vld [vmem:[%s1395_s5 + $0x18] sm:$0xff]  ;;  %v519_v2 = vld [vmem:[%s1395_s5 + $0x28] sm:$0xff] }
  0x32   :  { %875 = vmatprep.subr.bf16.mxu0 %v874_v5  ;;  %v906_v59 = vpack.c.bf16 %v515_v57, %v514_v56  ;;  %v909_v0 = vpack.c.bf16 %v517_v63, %v516_v62  ;;  %v518_v1 = vld [vmem:[%s1395_s5 + $0x20] sm:$0xff]  ;;  %v521_v4 = vld [vmem:[%s1395_s5 + $0x38] sm:$0xff] }
  0x33   :  { %v912_v3 = vpack.c.bf16 %v519_v2, %v518_v1  ;;  %v619_v6 = vld [vmem:[%s1394_s4] ss:$0 sm:$0xff] }
  0x34   :  { %898 = vmatpush3.bf16.msra.mxu1 %v897_v33 }
  0x35   :  { %877 = vmatpush3.bf16.msra.mxu0 %v876_v10  ;;  %899 = vmatprep.subr.bf16.mxu1 %v945_v50 }
  0x36   :  { %879 = vmatprep.subr.bf16.mxu0 %v878_v11 }
  0x38   :  { %901 = vmatpush3.bf16.msra.mxu1 %v900_v36 }
  0x39   :  { %881 = vmatpush3.bf16.msra.mxu0 %v880_v16  ;;  %902 = vmatprep.subr.bf16.mxu1 %v945_v50 }
  0x3a   :  { %883 = vmatprep.subr.bf16.mxu0 %v882_v17 }
  0x3c   :  { %904 = vmatpush3.bf16.msra.mxu1 %v903_v39 }
  0x3d   :  { %885 = vmatpush3.bf16.msra.mxu0 %v884_v22  ;;  %905 = vmatprep.subr.bf16.mxu1 %v945_v50 }
  0x3e   :  { %887 = vmatprep.subr.bf16.mxu0 %v886_v23 }
  0x41   :  { %889 = vmatpush3.bf16.msra.mxu0 %v888_v26 }
  0x44   :  { %348 = vmatmul.mubr.f32.vlgmr.msra.gmra.mrb[2].mxu0 %v31_v27 }
  0xf7   :  { %v655_v40 = vpop.f32.mrb[0].mxu0 }
  0xf8   :  { %v656_v42 = vpop.f32.mrb[1].mxu0 }
  0xf9   :  { %v690_v43 = vpop.f32.mrb[0].mxu1  ;;  %v657_v44 = vadd.f32 %v656_v42, %v655_v40 }
  0xfa   :  { %v691_v45 = vpop.f32.mrb[1].mxu1 }
  0xfb   :  { %v692_v46 = vadd.f32 %v691_v45, %v690_v43  ;;  %v210_v47 = vadd.f32 %v657_v44, %v617_v41 }
  0xfd   :  { %v280_v48 = vadd.f32 %v692_v46, %v210_v47  ;;  %v419_v49 = vpop.f32.mrb[2].mxu1 }
  0xfe   :  { %v755_v51 = vpop.f32.mrb[3].mxu1 }
 0x117   :  { %v725_v52 = vpop.f32.mrb[2].mxu0 }
 0x118   :  { %v726_v53 = vpop.f32.mrb[3].mxu0 }
 0x119   :  { %v727_v54 = vadd.f32 %v726_v53, %v725_v52 }
 0x11b   :  { %v350_v55 = vadd.f32 %v727_v54, %v280_v48 }
 0x11d   :  { %v420_v58 = vadd.f32 %v419_v49, %v350_v55 }
 0x11f   :  { %v423_v61 = vmax.f32 %v420_v58, 0.0 }
 0x121   :  { %773 = vmatmul.mubr.msk.f32.vlgmr.msra.gmra.mrb[4].mxu1 %vm439_vm2, %v423_v61 }
 0x122   :  { %907 = vmatpush3.bf16.msra.mxu1 %v906_v59  ;;  %791 = vmatprep.mubr.msk.f32.mxu1 %vm946_vm0, %v947_v60  ;;  %v520_v60 = vld [vmem:[%s1395_s5 + $0x30] sm:$0xff]  ;;  %s921_s5 = scalar_lea.vmem %s610_s14, 128 }
 0x123   :  { %908 = vmatprep.subr.bf16.mxu1 %v945_v50  ;;  %v915_v5 = vpack.c.bf16 %v521_v4, %v520_v60  ;;  %p922_p0 = scmp.ne.s32.totalorder %s610_s14, %s921_s5  ;;  %p927_p2 = scmp.lt.s32.totalorder %s921_s5, %s921_s5 }
 0x125   :  { %p928_p3 = por %p927_p2, %p926_p1 }
 0x126   :  { %910 = vmatpush3.bf16.msra.mxu1 %v909_v0 }
 0x127   :  { %911 = vmatprep.subr.bf16.mxu1 %v945_v50  ;;  %p929_p4 = pnand %p928_p3, %p922_p0 }
 0x12a   :  { %913 = vmatpush3.bf16.msra.mxu1 %v912_v3 }
 0x12b   :  { %914 = vmatprep.subr.bf16.mxu1 %v945_v50  ;;  %v621_v50 = vld [vmem:[%s1396_s6] ss:$0 sm:$0xff] }
 0x12e   :  { %916 = vmatpush3.bf16.msra.mxu1 %v915_v5 }
 0x1f4   :  { %v509_v7 = vpop.f32.mrb[4].mxu1 }
 0x1f5   :  { %v510_v8 = vadd.f32 %v619_v6, %v509_v7  ;;  %v774_v9 = vpop.f32.mrb[5].mxu1 }
 0x1f7   :  { %v513_v10 = vmax.f32 %v510_v8, 0.0 }
 0x1f9   :  { %792 = vmatmul.mubr.msk.f32.vlgmr.msra.gmra.mrb[6].mxu1 %vm439_vm2, %v513_v10 }
 0x2cc   :  { %v598_v11 = vpop.f32.mrb[6].mxu1 }
 0x2cd   :  { %v599_v12 = vadd.f32 %v621_v50, %v598_v11  ;;  %v793_v13 = vpop.f32.mrb[7].mxu1 }
 0x2cf   :  { %602 = vst [vmem:[#allocation2] sm:$0xff] %v599_v12 }
 0x2d0   :  { %932 = shalt.err (!%p929_p4)
}
 0x2d1   :  { %s933_s16 = scalar_lea.hbm %s1397_s7, 128 }
 0x2d2   :  { %p934_p5 = scmp.ne.s32.totalorder %s1397_s7, %s933_s16  ;;  %p937_p6 = scmp.lt.u32.totalorder %s933_s16, %s1397_s7 }
 0x2d4   :  { %p939_p7 = pnand %p937_p6, %p934_p5 }
 0x2d6   :  { %942 = shalt.err (!%p939_p7)
}
 0x2d7   :  { %612 = dma.vmem_to_hbm [thread:$0]  %s610_s14, 128, %s1397_s7, [#allocation3]  }
 0x2d8   :  { %943 = dma.done.wait [#allocation3], 128  }
 0x2d9   :  { %944 = vsyncadd [#allocation3], 4294967168 }
 0x2da   :  { %616 = vsyncpa [#allocation3], 1 }

</bundles_post_ra>
